<compile_context>
chip_gen: v7x
topology: tpu7x:2x2x1
jax: 0.10.0
libtpu: 0.0.40
codegen_flags: <defaults>
</compile_context>

<pallas_src>
import functools

import jax
import jax.numpy as jnp
from jax import lax
from jax.experimental import pallas as pl
from jax.experimental.pallas import tpu as pltpu


def _round_up(x, m):
    return ((x + m - 1) // m) * m


@functools.lru_cache(maxsize=1)
def _device_info():
    """Return (vmem_capacity_bytes, n_tensorcores) for the default device."""
    try:
        kind = jax.devices()[0].device_kind.lower()
    except Exception:
        kind = ""
    try:
        vmem = int(pltpu.get_tpu_info().vmem_capacity_bytes)
    except Exception:
        if "v7" in kind:
            vmem = 64 << 20           # v7x: 64 MiB per TensorCore
        elif any(t in kind for t in ("v5", "v6", "v4")):
            vmem = 128 << 20          # v4/v5e/v5p/v6e: 128 MiB
        else:
            vmem = 64 << 20           # conservative default
    # Megacore-style parts expose 2 TensorCores behind one device.
    n_tc = 2 if ("v7" in kind or "v4" in kind or "v5p" in kind) else 1
    return vmem, n_tc


def _pick_tk(d, b_pad, itemsize, n_split, vmem_budget, gram_bytes,
             target_tile_bytes=8 << 20):
    """Lane-tile width: ~8 MiB per (padded) input tile, clamped so that
    2 inputs x 2 buffers fit the VMEM budget next to the resident Grams,
    and never wider than one split's share of D."""
    in_budget = max(4 << 20, vmem_budget - gram_bytes - (6 << 20))
    cap = max(128, (in_budget // (4 * b_pad * itemsize)) // 128 * 128)
    tgt = max(128, _round_up(target_tile_bytes // (b_pad * itemsize), 128))
    want = _round_up(pl.cdiv(d, n_split), 128)      # per-split share of D
    return max(128, min(tgt, cap, want))


def _gram_kernel(fs_ref, ft_ref, gs_ref, gt_ref, *, kc, tk, d, mask_tail):
    """Accumulate partial Gram matrices over the D (lane) reduction axis.

    Grid = (n_split, kc): axis 0 is a 'parallel' split of the D reduction
    (megacore), axis 1 walks the D tiles owned by that split. Outputs are
    per-split partial Grams, resident in VMEM across axis 1.
    """
    c = pl.program_id(0)
    k = pl.program_id(1)

    @pl.when(k == 0)
    def _():
        gs_ref[...] = jnp.zeros_like(gs_ref)
        gt_ref[...] = jnp.zeros_like(gt_ref)

    fs = fs_ref[...]            # (B, tk), native dtype (no upcast)
    ft = ft_ref[...]

    if mask_tail:
        # Zero the lanes beyond the valid D range: the partial tail tile, and
        # (for an uneven split) any clamped fully-out-of-range tile. A select
        # (not a multiply) is used so garbage in the DMA pad region can't leak.
        tile_idx = c * kc + k
        valid = d - tile_idx * tk                       # scalar; may be <=0 or > tk
        lane = lax.broadcasted_iota(jnp.int32, fs.shape, 1)
        keep = lane < valid
        fs = jnp.where(keep, fs, jnp.zeros_like(fs))
        ft = jnp.where(keep, ft, jnp.zeros_like(ft))

    # Contract over the lane dim of BOTH operands: G += f @ f.T without
    # materializing the (tk, B) transpose.
    dn = (((1,), (1,)), ((), ()))
    gs_ref[...] += lax.dot_general(fs, fs, dn, preferred_element_type=jnp.float32)
    gt_ref[...] += lax.dot_general(ft, ft, dn, preferred_element_type=jnp.float32)


@functools.partial(jax.jit, static_argnames=("n_split",))
def correlation_loss(f_s, f_t, *, n_split=None):
    """Pallas implementation of Correlation.forward. Returns shape (1,) float32."""
    bsz = f_s.shape[0]
    fs2 = f_s.reshape(bsz, -1)
    ft2 = f_t.reshape(bsz, -1)
    assert fs2.shape == ft2.shape, "f_s and f_t must flatten to the same (B, D)"
    d = fs2.shape[1]
    itemsize = jnp.dtype(fs2.dtype).itemsize

    vmem_cap, n_tc = _device_info()
    vmem_budget = int(vmem_cap) * 3 // 4                # headroom for Mosaic scratch
    n_split = n_tc if n_split is None else max(1, int(n_split))

    # Real VMEM footprints include sublane/lane padding of the blocks.
    sublane = max(8, 32 // itemsize)                    # 8 f32, 16 bf16, 32 int8
    b_pad = _round_up(bsz, sublane)
    gram_bytes = 2 * 2 * _round_up(bsz, 8) * _round_up(bsz, 128) * 4  # 2 outs x 2 bufs, f32

    # Large-B guard: duplicated resident Grams must not squeeze the input tiles.
    if n_split > 1 and gram_bytes > vmem_budget // 4:
        n_split = 1

    tk = _pick_tk(d, b_pad, itemsize, n_split, vmem_budget, gram_bytes)
    kt = pl.cdiv(d, tk)                                 # total D tiles
    n_split = max(1, min(n_split, kt))                  # each split owns >= 1 tile
    kc = pl.cdiv(kt, n_split)                           # D tiles per split
    mask_tail = (d % tk != 0) or (kt % n_split != 0)    # ragged tail / uneven split
    clamp_needed = (kc * n_split > kt)                  # some (c, k) map past the last tile

    in_buf_bytes = 2 * 2 * b_pad * tk * itemsize        # 2 inputs x double buffer
    vmem_limit = int(max(32 << 20,
                         min(vmem_budget, in_buf_bytes + gram_bytes + (8 << 20))))

    if clamp_needed:
        last = kt - 1
        feat_idx = lambda c, k: (0, jnp.minimum(c * kc + k, last))
    else:
        feat_idx = lambda c, k: (0, c * kc + k)

    feat_spec = pl.BlockSpec((bsz, tk), feat_idx)
    gram_spec = pl.BlockSpec((None, bsz, bsz), lambda c, k: (c, 0, 0))

    kernel = functools.partial(_gram_kernel, kc=kc, tk=tk, d=d, mask_tail=mask_tail)
    cost = pl.CostEstimate(
        flops=4 * bsz * bsz * d,
        transcendentals=0,
        bytes_accessed=2 * bsz * d * itemsize + 2 * n_split * bsz * bsz * 4,
    )

    gs_parts, gt_parts = pl.pallas_call(
        kernel,
        out_shape=(
            jax.ShapeDtypeStruct((n_split, bsz, bsz), jnp.float32),
            jax.ShapeDtypeStruct((n_split, bsz, bsz), jnp.float32),
        ),
        grid=(n_split, kc),
        in_specs=[feat_spec, feat_spec],
        out_specs=(gram_spec, gram_spec),
        compiler_params=pltpu.CompilerParams(
            dimension_semantics=("parallel", "arbitrary"),
            vmem_limit_bytes=vmem_limit,
        ),
        cost_estimate=cost,
    )(fs2, ft2)

    # Tiny O(B^2) epilogue: combine per-split partials, Frobenius-normalize with
    # rsqrt (no divides), squared difference, constant 1/(B*B) multiply.
    g_s = gs_parts.sum(axis=0)
    g_t = gt_parts.sum(axis=0)
    g_s = g_s * lax.rsqrt(jnp.sum(g_s * g_s))
    g_t = g_t * lax.rsqrt(jnp.sum(g_t * g_t))
    diff = g_t - g_s
    loss = jnp.sum(diff * diff) * jnp.float32(1.0 / (bsz * bsz))
    return loss.reshape(1)  # match torch .view(-1,1).sum(0) -> shape (1,)


def _reference_loss(f_s, f_t):
    bsz = f_s.shape[0]
    fs2 = f_s.reshape(bsz, -1).astype(jnp.float32)
    ft2 = f_t.reshape(bsz, -1).astype(jnp.float32)
    g_s = fs2 @ fs2.T
    g_s = g_s / jnp.linalg.norm(g_s)
    g_t = ft2 @ ft2.T
    g_t = g_t / jnp.linalg.norm(g_t)
    diff = g_t - g_s
    return (jnp.sum(diff * diff) / (bsz * bsz)).reshape(1)


if __name__ == "__main__":
    key = jax.random.PRNGKey(0)
    k1, k2 = jax.random.split(key)

    # Case 1: small NCHW student/teacher features (D = 1024, tile-aligned path).
    f_s = jax.random.normal(k1, (2, 4, 16, 16), dtype=jnp.float32)
    f_t = jax.random.normal(k2, (2, 4, 16, 16), dtype=jnp.float32)
    loss = jax.block_until_ready(correlation_loss(f_s, f_t))
    ref = _reference_loss(f_s, f_t)
    assert loss.shape == (1,)
    assert jnp.allclose(loss, ref, rtol=1e-4, atol=1e-6), (loss, ref)

    # Case 2: ragged D (D = 300) exercises the in-kernel tail-masking path.
    k3, k4 = jax.random.split(k2)
    f_s2 = jax.random.normal(k3, (2, 3, 10, 10), dtype=jnp.float32)
    f_t2 = jax.random.normal(k4, (2, 3, 10, 10), dtype=jnp.float32)
    loss2 = jax.block_until_ready(correlation_loss(f_s2, f_t2))
    ref2 = _reference_loss(f_s2, f_t2)
    assert jnp.allclose(loss2, ref2, rtol=1e-4, atol=1e-6), (loss2, ref2)

    # Case 3: larger B with ragged D, forces multiple D tiles when split.
    k5, k6 = jax.random.split(k4)
    f_s3 = jax.random.normal(k5, (8, 5, 9, 9), dtype=jnp.float32)   # D = 405
    f_t3 = jax.random.normal(k6, (8, 5, 9, 9), dtype=jnp.float32)
    loss3 = jax.block_until_ready(correlation_loss(f_s3, f_t3))
    ref3 = _reference_loss(f_s3, f_t3)
    assert jnp.allclose(loss3, ref3, rtol=1e-4, atol=1e-6), (loss3, ref3)

    print("KERNEL_OK")
</pallas_src>

<mosaic_0001>
module attributes {stable_mosaic.version = 11 : i64} {
  func.func @_gram_kernel(%arg0: i32, %arg1: i32, %arg2: memref<2x1024xf32, #tpu.memory_space<vmem>>, %arg3: memref<2x1024xf32, #tpu.memory_space<vmem>>, %arg4: memref<1x2x2xf32, #tpu.memory_space<vmem>>, %arg5: memref<1x2x2xf32, #tpu.memory_space<vmem>>) attributes {dimension_semantics = [#tpu.dimension_semantics<parallel>, #tpu.dimension_semantics<arbitrary>], iteration_bounds = array<i64: 1, 1>, scalar_prefetch = 0 : i64, scratch_operands = 0 : i64, tpu.core_type = #tpu.core_type<tc>, window_params = [{transform_indices = @transform_0, window_bounds = array<i64: 2, 1024>}, {transform_indices = @transform_1, window_bounds = array<i64: 2, 1024>}, {transform_indices = @transform_2, window_bounds = array<i64: 1, 2, 2>}, {transform_indices = @transform_3, window_bounds = array<i64: 1, 2, 2>}]} {
    %c0_i32 = arith.constant 0 : i32
    %0 = arith.cmpi eq, %arg1, %c0_i32 : i32
    %1 = arith.extui %0 : i1 to i32
    %c0_i32_0 = arith.constant 0 : i32
    %2 = arith.cmpi ne, %1, %c0_i32_0 : i32
    scf.if %2 {
      %cst_17 = arith.constant 0.000000e+00 : f32
      %19 = vector.broadcast %cst_17 : f32 to vector<2x2xf32>
      %c0_18 = arith.constant 0 : index
      %c0_19 = arith.constant 0 : index
      %c0_20 = arith.constant 0 : index
      %20 = vector.load %arg4[%c0_18, %c0_19, %c0_20] : memref<1x2x2xf32, #tpu.memory_space<vmem>>, vector<1x2x2xf32>
      %21 = vector.shape_cast %20 : vector<1x2x2xf32> to vector<2x2xf32>
      %22 = vector.shape_cast %19 : vector<2x2xf32> to vector<1x2x2xf32>
      tpu.vector_store %arg4[%c0_18, %c0_19, %c0_20], %22 {strides = array<i32>} : memref<1x2x2xf32, #tpu.memory_space<vmem>>, vector<1x2x2xf32>,
      %cst_21 = arith.constant 0.000000e+00 : f32
      %23 = vector.broadcast %cst_21 : f32 to vector<2x2xf32>
      %c0_22 = arith.constant 0 : index
      %c0_23 = arith.constant 0 : index
      %c0_24 = arith.constant 0 : index
      %24 = vector.load %arg5[%c0_22, %c0_23, %c0_24] : memref<1x2x2xf32, #tpu.memory_space<vmem>>, vector<1x2x2xf32>
      %25 = vector.shape_cast %24 : vector<1x2x2xf32> to vector<2x2xf32>
      %26 = vector.shape_cast %23 : vector<2x2xf32> to vector<1x2x2xf32>
      tpu.vector_store %arg5[%c0_22, %c0_23, %c0_24], %26 {strides = array<i32>} : memref<1x2x2xf32, #tpu.memory_space<vmem>>, vector<1x2x2xf32>,
    } else {
    }
    %c0 = arith.constant 0 : index
    %c0_1 = arith.constant 0 : index
    %3 = vector.load %arg2[%c0, %c0_1] : memref<2x1024xf32, #tpu.memory_space<vmem>>, vector<2x1024xf32>
    %c0_2 = arith.constant 0 : index
    %c0_3 = arith.constant 0 : index
    %4 = vector.load %arg3[%c0_2, %c0_3] : memref<2x1024xf32, #tpu.memory_space<vmem>>, vector<2x1024xf32>
    %c0_4 = arith.constant 0 : index
    %c0_5 = arith.constant 0 : index
    %c0_6 = arith.constant 0 : index
    %5 = vector.load %arg4[%c0_4, %c0_5, %c0_6] : memref<1x2x2xf32, #tpu.memory_space<vmem>>, vector<1x2x2xf32>
    %6 = vector.shape_cast %5 : vector<1x2x2xf32> to vector<2x2xf32>
    %cst = arith.constant dense<0.000000e+00> : vector<2x2xf32>
    %7 = tpu.matmul %3, %3, %cst {dimension_numbers = #tpu.dot_dimension_numbers<[1], [1], [0], [0], [0, 0, 1, 0], [], []>} : vector<2x1024xf32>, vector<2x1024xf32>, vector<2x2xf32> -> vector<2x2xf32>
    %8 = arith.addf %6, %7 : vector<2x2xf32>
    %c0_7 = arith.constant 0 : index
    %c0_8 = arith.constant 0 : index
    %c0_9 = arith.constant 0 : index
    %9 = vector.load %arg4[%c0_7, %c0_8, %c0_9] : memref<1x2x2xf32, #tpu.memory_space<vmem>>, vector<1x2x2xf32>
    %10 = vector.shape_cast %9 : vector<1x2x2xf32> to vector<2x2xf32>
    %11 = vector.shape_cast %8 : vector<2x2xf32> to vector<1x2x2xf32>
    tpu.vector_store %arg4[%c0_7, %c0_8, %c0_9], %11 {strides = array<i32>} : memref<1x2x2xf32, #tpu.memory_space<vmem>>, vector<1x2x2xf32>,
    %c0_10 = arith.constant 0 : index
    %c0_11 = arith.constant 0 : index
    %c0_12 = arith.constant 0 : index
    %12 = vector.load %arg5[%c0_10, %c0_11, %c0_12] : memref<1x2x2xf32, #tpu.memory_space<vmem>>, vector<1x2x2xf32>
    %13 = vector.shape_cast %12 : vector<1x2x2xf32> to vector<2x2xf32>
    %cst_13 = arith.constant dense<0.000000e+00> : vector<2x2xf32>
    %14 = tpu.matmul %4, %4, %cst_13 {dimension_numbers = #tpu.dot_dimension_numbers<[1], [1], [0], [0], [0, 0, 1, 0], [], []>} : vector<2x1024xf32>, vector<2x1024xf32>, vector<2x2xf32> -> vector<2x2xf32>
    %15 = arith.addf %13, %14 : vector<2x2xf32>
    %c0_14 = arith.constant 0 : index
    %c0_15 = arith.constant 0 : index
    %c0_16 = arith.constant 0 : index
    %16 = vector.load %arg5[%c0_14, %c0_15, %c0_16] : memref<1x2x2xf32, #tpu.memory_space<vmem>>, vector<1x2x2xf32>
    %17 = vector.shape_cast %16 : vector<1x2x2xf32> to vector<2x2xf32>
    %18 = vector.shape_cast %15 : vector<2x2xf32> to vector<1x2x2xf32>
    tpu.vector_store %arg5[%c0_14, %c0_15, %c0_16], %18 {strides = array<i32>} : memref<1x2x2xf32, #tpu.memory_space<vmem>>, vector<1x2x2xf32>,
    return
  }
  func.func @transform_0(%arg0: i32, %arg1: i32) -> (i32, i32) {
    %c1_i32 = arith.constant 1 : i32
    %0 = arith.muli %arg0, %c1_i32 : i32
    %1 = arith.addi %0, %arg1 : i32
    %c0_i32 = arith.constant 0 : i32
    %c0_i32_0 = arith.constant 0 : i32
    return %c0_i32, %1 : i32, i32
  }
  func.func @transform_1(%arg0: i32, %arg1: i32) -> (i32, i32) {
    %c1_i32 = arith.constant 1 : i32
    %0 = arith.muli %arg0, %c1_i32 : i32
    %1 = arith.addi %0, %arg1 : i32
    %c0_i32 = arith.constant 0 : i32
    %c0_i32_0 = arith.constant 0 : i32
    return %c0_i32, %1 : i32, i32
  }
  func.func @transform_2(%arg0: i32, %arg1: i32) -> (i32, i32, i32) {
    %c0_i32 = arith.constant 0 : i32
    %c0_i32_0 = arith.constant 0 : i32
    %c0_i32_1 = arith.constant 0 : i32
    return %arg0, %c0_i32, %c0_i32_0 : i32, i32, i32
  }
  func.func @transform_3(%arg0: i32, %arg1: i32) -> (i32, i32, i32) {
    %c0_i32 = arith.constant 0 : i32
    %c0_i32_0 = arith.constant 0 : i32
    %c0_i32_1 = arith.constant 0 : i32
    return %arg0, %c0_i32, %c0_i32_0 : i32, i32, i32
  }
}

</mosaic_0001>

<bundles_post_ra>
// kernel: correlation_loss.1
= control target key start
LH: loop header
LB: loop body
LE: loop exit
PB: predicated region body
PF: predicated region fallthrough
CT: control target
= control target key end

     0   :  { %v75_v0 = vlaneseq  ;;  %v749_v3 = vmov 1983009808   ;;  %vm61_vm0 = vcmask 9216   ;;  %v750_v30 = vmov 0.0   ;;  %s805_s0 = inlined_call_operand.vmem [shape: f32[2,1024], index: 0, kind: input, shape index: {}]   ;;  %s806_s1 = inlined_call_operand.vmem [shape: f32[2,1024], index: 1, kind: input, shape index: {}]   ;;  %s807_s2 = inlined_call_operand.vmem [shape: f32[1,2,2], index: 2, kind: output, shape index: {0}]   ;;  %s808_s3 = inlined_call_operand.vmem [shape: f32[1,2,2], index: 3, kind: output, shape index: {1}]  }
   0x1   :  { %v64_v1 = vld [vmem:[%s805_s0] sm:$0xff]  ;;  %v65_v2 = vld [vmem:[%s805_s0 + $0x8] sm:$0xff]  ;;  %v73_v4 = vunpack.c.l.s4 %v749_v3  ;;  %62 = vst.msk [vmem:[%s807_s2] sm:$0x3] %vm61_vm0, %v750_v30  ;;  %63 = vst.msk [vmem:[%s808_s3] sm:$0x3] %vm61_vm0, %v750_v30 }
   0x2   :  { %v76_v5 = vshrl.u32 %v75_v0, 7  ;;  %v88_v7 = vcombine.high %v65_v2, %v65_v2  ;;  %v71_v8 = vcombine.high %v64_v1, %v64_v1  ;;  %v66_v9 = vld [vmem:[%s806_s1] sm:$0xff]  ;;  %v67_v12 = vld [vmem:[%s806_s1 + $0x8] sm:$0xff] }
   0x3   :  { %v74_v6 = vunpack.c.0.s8 %v73_v4  ;;  %v399_v11 = vcombine.high %v66_v9, %v66_v9  ;;  %v416_v19 = vcombine.high %v67_v12, %v67_v12 }
   0x5   :  { %v77_v10 = vsub.s32 %v74_v6, %v76_v5 }
   0x7   :  { %v78_v13 = vrot.slane %v64_v1, %v77_v10  ;;  %v85_v14 = vrot.slane %v71_v8, %v77_v10  ;;  %v95_v15 = vrot.slane %v65_v2, %v77_v10  ;;  %v102_v16 = vrot.slane %v88_v7, %v77_v10 }
   0x8   :  { %v406_v22 = vrot.slane %v66_v9, %v77_v10  ;;  %v413_v23 = vrot.slane %v399_v11, %v77_v10  ;;  %v423_v24 = vrot.slane %v67_v12, %v77_v10  ;;  %v430_v27 = vrot.slane %v416_v19, %v77_v10  ;;  %v68_v41 = vld [vmem:[%s807_s2] sm:$0x3] }
   0x9   :  { %v86_v17 = vcombine.high %v78_v13, %v78_v13  ;;  %v87_v18 = vcombine.high %v85_v14, %v85_v14  ;;  %v103_v20 = vcombine.high %v95_v15, %v95_v15  ;;  %v104_v21 = vcombine.high %v102_v16, %v102_v16  ;;  %v396_v53 = vld [vmem:[%s808_s3] sm:$0x3] }
   0xa   :  { %v414_v25 = vcombine.high %v406_v22, %v406_v22  ;;  %v415_v26 = vcombine.high %v413_v23, %v413_v23  ;;  %v431_v28 = vcombine.high %v423_v24, %v423_v24  ;;  %v432_v29 = vcombine.high %v430_v27, %v430_v27 }
   0xb   :  { %113 = vmatprep.subr.mxu0 %v86_v17  ;;  %183 = vmatprep.subr.mxu1 %v87_v18 }
   0xc   :  { %114 = vmatpush1.xpose.msra.mxu0 %v78_v13  ;;  %184 = vmatpush1.xpose.msra.mxu1 %v85_v14 }
   0xd   :  { %177 = vmatprep.mubr.f32.mxu0 %v86_v17  ;;  %247 = vmatprep.mubr.f32.mxu1 %v87_v18 }
   0xe   :  { %253 = vmatprep.subr.mxu0 %v103_v20  ;;  %323 = vmatprep.subr.mxu1 %v104_v21 }
   0xf   :  { %178 = vmatmul.mubr.f32.vlgmr.msra.gmra.mrb[0].mxu0 %v78_v13  ;;  %248 = vmatmul.mubr.f32.vlgmr.msra.gmra.mrb[0].mxu1 %v85_v14 }
  0x10   :  { %254 = vmatpush1.xpose.msra.mxu0 %v95_v15  ;;  %324 = vmatpush1.xpose.msra.mxu1 %v102_v16 }
  0x11   :  { %317 = vmatprep.mubr.f32.mxu0 %v103_v20  ;;  %387 = vmatprep.mubr.f32.mxu1 %v104_v21 }
  0x12   :  { %441 = vmatprep.subr.mxu0 %v414_v25  ;;  %511 = vmatprep.subr.mxu1 %v415_v26 }
  0x13   :  { %318 = vmatmul.mubr.f32.vlgmr.msra.gmra.mrb[2].mxu0 %v95_v15  ;;  %388 = vmatmul.mubr.f32.vlgmr.msra.gmra.mrb[2].mxu1 %v102_v16 }
  0x14   :  { %442 = vmatpush1.xpose.msra.mxu0 %v406_v22  ;;  %512 = vmatpush1.xpose.msra.mxu1 %v413_v23 }
  0x15   :  { %505 = vmatprep.mubr.f32.mxu0 %v414_v25  ;;  %575 = vmatprep.mubr.f32.mxu1 %v415_v26 }
  0x16   :  { %581 = vmatprep.subr.mxu0 %v431_v28  ;;  %651 = vmatprep.subr.mxu1 %v432_v29 }
  0x17   :  { %506 = vmatmul.mubr.f32.vlgmr.msra.gmra.mrb[4].mxu0 %v406_v22  ;;  %576 = vmatmul.mubr.f32.vlgmr.msra.gmra.mrb[4].mxu1 %v413_v23 }
  0x18   :  { %582 = vmatpush1.xpose.msra.mxu0 %v423_v24  ;;  %645 = vmatprep.mubr.f32.mxu0 %v431_v28 }
  0x19   :  { %652 = vmatpush1.xpose.msra.mxu1 %v430_v27  ;;  %715 = vmatprep.mubr.f32.mxu1 %v432_v29 }
  0x1b   :  { %646 = vmatmul.mubr.f32.vlgmr.msra.gmra.mrb[6].mxu0 %v423_v24 }
  0x1c   :  { %716 = vmatmul.mubr.f32.vlgmr.msra.gmra.mrb[6].mxu1 %v430_v27 }
  0xe2   :  { %v179_v31 = vpop.f32.mrb[0].mxu0  ;;  %v249_v32 = vpop.f32.mrb[0].mxu1 }
  0xe3   :  { %v181_v33 = vpop.f32.mrb[1].mxu0  ;;  %v250_v34 = vadd.f32 %v249_v32, %v179_v31  ;;  %v251_v35 = vpop.f32.mrb[1].mxu1 }
  0xe6   :  { %v319_v36 = vpop.f32.mrb[2].mxu0  ;;  %v389_v37 = vpop.f32.mrb[2].mxu1 }
  0xe7   :  { %v320_v38 = vadd.f32 %v319_v36, %v250_v34  ;;  %v321_v39 = vpop.f32.mrb[3].mxu0  ;;  %v391_v40 = vpop.f32.mrb[3].mxu1 }
  0xe9   :  { %v390_v42 = vadd.f32 %v389_v37, %v320_v38 }
  0xea   :  { %v507_v43 = vpop.f32.mrb[4].mxu0  ;;  %v577_v44 = vpop.f32.mrb[4].mxu1 }
  0xeb   :  { %v393_v45 = vadd.f32 %v390_v42, %v68_v41  ;;  %v509_v46 = vpop.f32.mrb[5].mxu0  ;;  %v578_v47 = vadd.f32 %v577_v44, %v507_v43  ;;  %v579_v48 = vpop.f32.mrb[5].mxu1 }
  0xed   :  { %395 = vst.msk [vmem:[%s807_s2] sm:$0x3] %vm61_vm0, %v393_v45 }
  0xee   :  { %v647_v49 = vpop.f32.mrb[6].mxu0 }
  0xef   :  { %v648_v50 = vadd.f32 %v647_v49, %v578_v47  ;;  %v649_v51 = vpop.f32.mrb[7].mxu0  ;;  %v717_v52 = vpop.f32.mrb[6].mxu1 }
  0xf0   :  { %v719_v54 = vpop.f32.mrb[7].mxu1 }
  0xf1   :  { %v718_v55 = vadd.f32 %v717_v52, %v648_v50 }
  0xf3   :  { %v721_v56 = vadd.f32 %v718_v55, %v396_v53 }
  0xf5   :  { %722 = vst.msk [vmem:[%s808_s3] sm:$0x3] %vm61_vm0, %v721_v56 }

</bundles_post_ra>
